<compile_context>
chip_gen: v7x
topology: tpu7x:2x2x1
jax: 0.10.0
libtpu: 0.0.40
codegen_flags: <defaults>
</compile_context>

<pallas_src>
import jax
import jax.numpy as jnp
from jax.experimental import pallas as pl
from jax.experimental.pallas import tpu as pltpu


def _sap_kernel(x_ref, w1_ref, b1_ref, w2_ref, out_ref):
    # x_ref  : (BB, T, H) bf16 block of the batch
    # w1_ref : (H, A) bf16   (grid-resident)
    # b1_ref : (1, A) f32
    # w2_ref : (1, A) f32    (the (A, 1) Linear weight, transposed)
    # out_ref: (BB, H) f32
    BB, T, H = x_ref.shape
    A = w1_ref.shape[1]

    x = x_ref[...]                                     # (BB, T, H) bf16
    x2d = x.reshape(BB * T, H)                         # flatten batch*time for the MXU

    # ---- Linear(H->A) on the MXU: bf16 operands, f32 accumulation ----
    h = jnp.dot(x2d, w1_ref[...], preferred_element_type=jnp.float32)   # (BB*T, A)
    h = jnp.maximum(h + b1_ref[...], 0.0)              # bias + ReLU (VPU, f32)

    # ---- Linear(A->1, no bias) as VPU multiply + lane reduce ----
    s = jnp.sum((h * w2_ref[...]).reshape(BB, T, A), axis=-1)           # (BB, T) f32

    # ---- softmax over time, numerically stabilized ----
    m = jnp.max(s, axis=-1, keepdims=True)             # (BB, 1)
    e = jnp.exp(s - m)                                 # (BB, T)   (EUP)
    denom = jnp.sum(e, axis=-1, keepdims=True)         # (BB, 1)
    wts = e * pl.reciprocal(denom, approx=True)        # (BB, T)   (EUP vrcp)

    # ---- weighted sum over time: bf16 product, f32 accumulation ----
    prod = wts.astype(jnp.bfloat16)[:, :, None] * x    # (BB, T, H) bf16
    pooled = jnp.sum(prod, axis=1, dtype=jnp.float32)  # (BB, H) f32
    out_ref[...] = pooled.astype(out_ref.dtype)


def _plan_blocks(B, T, H, A):
    """Pick the batch-block size BB and the scoped-VMEM limit.

    Conservative per-batch-element footprint (bytes):
      bf16 x double-buffered (4*T*H) + bf16 pooling product and a possible f32
      copy at the reduce (6*T*H) + f32 hidden activation (4*T*A) with slack
      (8*T*A total) + double-buffered f32 output row (8*H).
    """
    phys = 64 * 1024 * 1024                       # v7x per-TC VMEM (smallest gen)
    try:
        info = pltpu.get_tpu_info()
        phys = int(getattr(info, "vmem_capacity_bytes", phys))
    except Exception:
        pass
    vmem_limit = min(phys * 3 // 4, 96 * 1024 * 1024)   # 48 MiB on v7x, 96 MiB on v5e/v6e

    per_b = 12 * T * H + 8 * T * A + 8 * H + 256
    weights_bytes = 2 * H * A + 8 * A
    budget = int(vmem_limit * 0.6) - weights_bytes

    bb = min(max(budget // max(per_b, 1), 8), 1024)
    bb -= bb % 8                                   # keep the output block sublane-dense
    if B <= bb:
        return B, vmem_limit                       # single block; dims equal full dims

    # Multi-TC parts (v7x): keep >= 2 grid steps so ("parallel",) can shard them.
    if B >= 16:
        half = (B // 2) - ((B // 2) % 8)
        if half >= 8:
            bb = min(bb, half)

    # Make sure the scoped limit actually covers the chosen block.
    needed = per_b * bb + weights_bytes + (4 << 20)
    vmem_limit = max(vmem_limit, min(needed, phys - (4 << 20)))
    return bb, vmem_limit


def self_attentive_pooling(x, w1, b1, w2):
    """x: (B, T, H) f32; w1: (H, A); b1: (A,); w2: (A, 1). Returns (B, H) f32."""
    B, T, H = x.shape
    A = w1.shape[1]

    # One-time casts in the wrapper: bf16 stream for x, bf16 resident W1.
    x_bf = x.astype(jnp.bfloat16)
    w1_bf = w1.astype(jnp.bfloat16)
    b1_2d = b1.reshape(1, A).astype(jnp.float32)
    w2_row = w2.reshape(1, A).astype(jnp.float32)

    BB, vmem_limit = _plan_blocks(B, T, H, A)
    B_pad = ((B + BB - 1) // BB) * BB
    if B_pad != B:
        x_bf = jnp.pad(x_bf, ((0, B_pad - B), (0, 0), (0, 0)))
    grid = (B_pad // BB,)

    flops = 2 * B_pad * T * H * A + 2 * B_pad * T * A + 2 * B_pad * T * H
    transcendentals = B_pad * T + B_pad
    bytes_accessed = (2 * x_bf.size + 2 * w1_bf.size
                      + 4 * (b1_2d.size + w2_row.size) + 4 * B_pad * H)

    out = pl.pallas_call(
        _sap_kernel,
        out_shape=jax.ShapeDtypeStruct((B_pad, H), jnp.float32),
        grid_spec=pltpu.PrefetchScalarGridSpec(
            num_scalar_prefetch=0,
            grid=grid,
            in_specs=[
                pl.BlockSpec((BB, T, H), lambda b: (b, 0, 0)),   # bf16 batch-block of x
                pl.BlockSpec((H, A), lambda b: (0, 0)),          # W1 (resident, bf16)
                pl.BlockSpec((1, A), lambda b: (0, 0)),          # b1 (resident, f32)
                pl.BlockSpec((1, A), lambda b: (0, 0)),          # w2 row (resident, f32)
            ],
            out_specs=pl.BlockSpec((BB, H), lambda b: (b, 0)),   # sublane/lane-dense
        ),
        compiler_params=pltpu.CompilerParams(
            dimension_semantics=("parallel",),                   # megacore over batch blocks
            vmem_limit_bytes=int(vmem_limit),
        ),
        cost_estimate=pl.CostEstimate(
            flops=flops,
            transcendentals=transcendentals,
            bytes_accessed=bytes_accessed,
        ),
    )(x_bf, w1_bf, b1_2d, w2_row)

    return out if B_pad == B else out[:B]


def reference(x, w1, b1, w2):
    """Pure-JAX f32 reference mirroring the PyTorch forward."""
    h = jnp.maximum(jnp.einsum("bth,ha->bta", x, w1) + b1, 0.0)
    attn = jnp.einsum("bta,ao->bto", h, w2)[..., 0]          # (B, T)
    weights = jax.nn.softmax(attn, axis=1)                   # (B, T)
    return jnp.sum(x * weights[..., None], axis=1)           # (B, H)


if __name__ == "__main__":
    # Small shapes consistent with the module: hid_size=32 -> attn_size=16.
    B, T, H = 2, 8, 32
    A = H // 2

    key = jax.random.PRNGKey(0)
    kx, kw1, kb1, kw2 = jax.random.split(key, 4)

    x = jax.random.normal(kx, (B, T, H), dtype=jnp.float32)
    # Deterministic synthetic parameters (shapes match nn.Linear(H,A), nn.Linear(A,1,bias=False)).
    w1 = jax.random.normal(kw1, (H, A), dtype=jnp.float32) * 0.1
    b1 = jax.random.normal(kb1, (A,), dtype=jnp.float32) * 0.1
    w2 = jax.random.normal(kw2, (A, 1), dtype=jnp.float32) * 0.1

    out = jax.block_until_ready(self_attentive_pooling(x, w1, b1, w2))
    ref = reference(x, w1, b1, w2)

    assert out.shape == (B, H), out.shape
    # Tolerance loosened vs pure-f32: x and W1 are streamed/held as bf16
    # (f32 MXU accumulation), the pooling product is bf16 with f32 accumulation,
    # and softmax uses the EUP approx reciprocal.
    assert jnp.allclose(out, ref, atol=3e-2, rtol=2e-2), (
        f"max abs err {jnp.max(jnp.abs(out - ref))}"
    )
    print("KERNEL_OK")
</pallas_src>

<mosaic_0001>
module attributes {stable_mosaic.version = 11 : i64} {
  func.func @_sap_kernel(%arg0: i32, %arg1: memref<2x8x32xbf16, #tpu.memory_space<vmem>>, %arg2: memref<32x16xbf16, #tpu.memory_space<vmem>>, %arg3: memref<1x16xf32, #tpu.memory_space<vmem>>, %arg4: memref<1x16xf32, #tpu.memory_space<vmem>>, %arg5: memref<2x32xf32, #tpu.memory_space<vmem>>) attributes {dimension_semantics = [#tpu.dimension_semantics<parallel>], iteration_bounds = array<i64: 1>, scalar_prefetch = 0 : i64, scratch_operands = 0 : i64, tpu.core_type = #tpu.core_type<tc>, window_params = [{transform_indices = @transform_0, window_bounds = array<i64: 2, 8, 32>}, {pipeline_mode = #tpu.pipeline_mode<synchronous>, transform_indices = @transform_1, window_bounds = array<i64: 32, 16>}, {pipeline_mode = #tpu.pipeline_mode<synchronous>, transform_indices = @transform_2, window_bounds = array<i64: 1, 16>}, {pipeline_mode = #tpu.pipeline_mode<synchronous>, transform_indices = @transform_3, window_bounds = array<i64: 1, 16>}, {transform_indices = @transform_4, window_bounds = array<i64: 2, 32>}]} {
    %c0 = arith.constant 0 : index
    %c0_0 = arith.constant 0 : index
    %c0_1 = arith.constant 0 : index
    %0 = vector.load %arg1[%c0, %c0_0, %c0_1] : memref<2x8x32xbf16, #tpu.memory_space<vmem>>, vector<2x8x32xbf16>
    %1 = vector.shape_cast %0 : vector<2x8x32xbf16> to vector<16x32xbf16>
    %c0_2 = arith.constant 0 : index
    %c0_3 = arith.constant 0 : index
    %2 = vector.load %arg2[%c0_2, %c0_3] : memref<32x16xbf16, #tpu.memory_space<vmem>>, vector<32x16xbf16>
    %cst = arith.constant dense<0.000000e+00> : vector<16x16xf32>
    %3 = tpu.matmul %1, %2, %cst {dimension_numbers = #tpu.dot_dimension_numbers<[1], [0], [0], [1], [0, 0, 1, 1], [], []>} : vector<16x32xbf16>, vector<32x16xbf16>, vector<16x16xf32> -> vector<16x16xf32>
    %c0_4 = arith.constant 0 : index
    %c0_5 = arith.constant 0 : index
    %4 = vector.load %arg3[%c0_4, %c0_5] : memref<1x16xf32, #tpu.memory_space<vmem>>, vector<1x16xf32>
    %5 = vector.broadcast %4 : vector<1x16xf32> to vector<16x16xf32>
    %6 = arith.addf %3, %5 : vector<16x16xf32>
    %cst_6 = arith.constant 0.000000e+00 : f32
    %7 = vector.broadcast %cst_6 : f32 to vector<16x16xf32>
    %8 = arith.maximumf %6, %7 : vector<16x16xf32>
    %c0_7 = arith.constant 0 : index
    %c0_8 = arith.constant 0 : index
    %9 = vector.load %arg4[%c0_7, %c0_8] : memref<1x16xf32, #tpu.memory_space<vmem>>, vector<1x16xf32>
    %10 = vector.broadcast %9 : vector<1x16xf32> to vector<16x16xf32>
    %11 = arith.mulf %8, %10 : vector<16x16xf32>
    %12 = vector.shape_cast %11 : vector<16x16xf32> to vector<2x8x16xf32>
    %cst_9 = arith.constant dense<0.000000e+00> : vector<2x8xf32>
    %13 = vector.multi_reduction <add>, %12, %cst_9 [2] : vector<2x8x16xf32> to vector<2x8xf32>
    %cst_10 = arith.constant dense<0xFF800000> : vector<2xf32>
    %14 = vector.multi_reduction <maximumf>, %13, %cst_10 [1] : vector<2x8xf32> to vector<2xf32>
    %15 = vector.shape_cast %14 : vector<2xf32> to vector<2x1xf32>
    %16 = vector.broadcast %15 : vector<2x1xf32> to vector<2x8xf32>
    %17 = arith.subf %13, %16 : vector<2x8xf32>
    %18 = math.exp %17 : vector<2x8xf32>
    %cst_11 = arith.constant dense<0.000000e+00> : vector<2xf32>
    %19 = vector.multi_reduction <add>, %18, %cst_11 [1] : vector<2x8xf32> to vector<2xf32>
    %20 = vector.shape_cast %19 : vector<2xf32> to vector<2x1xf32>
    %21 = tpu.reciprocal %20 {approx = true} : vector<2x1xf32> -> vector<2x1xf32>
    %22 = vector.broadcast %21 : vector<2x1xf32> to vector<2x8xf32>
    %23 = arith.mulf %18, %22 : vector<2x8xf32>
    %24 = arith.truncf %23 : vector<2x8xf32> to vector<2x8xbf16>
    %25 = vector.shape_cast %24 : vector<2x8xbf16> to vector<2x8x1xbf16>
    %26 = vector.broadcast %25 : vector<2x8x1xbf16> to vector<2x8x32xbf16>
    %27 = arith.mulf %26, %0 : vector<2x8x32xbf16>
    %28 = arith.extf %27 : vector<2x8x32xbf16> to vector<2x8x32xf32>
    %cst_12 = arith.constant dense<0.000000e+00> : vector<2x32xf32>
    %29 = vector.multi_reduction <add>, %28, %cst_12 [1] : vector<2x8x32xf32> to vector<2x32xf32>
    %c0_13 = arith.constant 0 : index
    %c0_14 = arith.constant 0 : index
    %30 = vector.load %arg5[%c0_13, %c0_14] : memref<2x32xf32, #tpu.memory_space<vmem>>, vector<2x32xf32>
    tpu.vector_store %arg5[%c0_13, %c0_14], %29 {strides = array<i32>} : memref<2x32xf32, #tpu.memory_space<vmem>>, vector<2x32xf32>,
    return
  }
  func.func @transform_0(%arg0: i32) -> (i32, i32, i32) {
    %c0_i32 = arith.constant 0 : i32
    %c0_i32_0 = arith.constant 0 : i32
    %c0_i32_1 = arith.constant 0 : i32
    return %arg0, %c0_i32, %c0_i32_0 : i32, i32, i32
  }
  func.func @transform_1(%arg0: i32) -> (i32, i32) {
    %c0_i32 = arith.constant 0 : i32
    %c0_i32_0 = arith.constant 0 : i32
    %c0_i32_1 = arith.constant 0 : i32
    return %c0_i32, %c0_i32_0 : i32, i32
  }
  func.func @transform_2(%arg0: i32) -> (i32, i32) {
    %c0_i32 = arith.constant 0 : i32
    %c0_i32_0 = arith.constant 0 : i32
    %c0_i32_1 = arith.constant 0 : i32
    return %c0_i32, %c0_i32_0 : i32, i32
  }
  func.func @transform_3(%arg0: i32) -> (i32, i32) {
    %c0_i32 = arith.constant 0 : i32
    %c0_i32_0 = arith.constant 0 : i32
    %c0_i32_1 = arith.constant 0 : i32
    return %c0_i32, %c0_i32_0 : i32, i32
  }
  func.func @transform_4(%arg0: i32) -> (i32, i32) {
    %c0_i32 = arith.constant 0 : i32
    %c0_i32_0 = arith.constant 0 : i32
    return %arg0, %c0_i32 : i32, i32
  }
}

</mosaic_0001>

<bundles_post_ra>
// kernel: tpu_custom_call.1
= control target key start
LH: loop header
LB: loop body
LE: loop exit
PB: predicated region body
PF: predicated region fallthrough
CT: control target
= control target key end

     0   :  { %v289_v1 = vmov 0.0   ;;  %vm290_vm0 = vmmov 0   ;;  %s364_s0 = inlined_call_operand.vmem [shape: bf16[2,8,32], index: 0, kind: input, shape index: {}]   ;;  %s365_s1 = inlined_call_operand.vmem [shape: bf16[32,16], index: 1, kind: input, shape index: {}]   ;;  %s366_s2 = inlined_call_operand.vmem [shape: f32[1,16], index: 2, kind: input, shape index: {}]   ;;  %s367_s3 = inlined_call_operand.vmem [shape: f32[1,16], index: 3, kind: input, shape index: {}]   ;;  %s368_s4 = inlined_call_operand.hbm [shape: f32[2,32], index: 4, kind: output, shape index: {}]  }
   0x1   :  { %v256_v0 = vld [vmem:[%s365_s1] sm:$0xff]   ;;  %242 = vmatprep.subr.bf16.mxu0 %v289_v1  ;;  %v257_v2 = vld [vmem:[%s365_s1 + $0x8] sm:$0xff]   ;;  %246 = vmatprep.mubr.msk.bf16.mxu0 %vm290_vm0, %v289_v1 }
   0x2   :  { %243 = vmatpush3.bf16.msra.mxu0 %v256_v0  ;;  %v327_v3 = vld [vmem:[%s364_s0] sm:$0xf]  ;;  %v332_v4 = vld [vmem:[%s364_s0 + $0x4] sm:$0xf] }
   0x3   :  { %244 = vmatprep.subr.bf16.mxu0 %v289_v1 }
   0x4   :  { %9 = vsyncpa [#allocation3], 0  ;;  %v234_v5 = vcombine.low %v327_v3, %v332_v4  ;;  %vm49_vm1 = vcmask 261120   ;;  %v233_v6 = vld [vmem:[%s366_s2] ss:$0 sm:$0xff]  ;;  %vm105_vm2 = vcmask 130048   ;;  %v114_v20 = vlaneseq }
   0x5   :  { %v238_v11 = vld [vmem:[%s367_s3] ss:$0 sm:$0xff]  ;;  %vm124_vm3 = vcmask 1041409   ;;  %vm127_vm4 = vcmask 58368   ;;  %v291_v30 = vmov 0   ;;  %s292_s2 = smov [#allocation2]  }
   0x6   :  { %245 = vmatpush3.bf16.msra.mxu0 %v257_v2  ;;  %v115_v21 = vand.u32 127, %v114_v20  ;;  %v117_v22 = vshrl.u32 %v114_v20, 7  ;;  %255 = vset.pattern.permute.xlu0 %v291_v30  ;;  %s225_s3 = sshll.u32 %s292_s2, 4  ;;  %vm217_vm5 = vcmask 254976   ;;  %s226_s3 = int_to_ptr.vmem [resolvable:$true] %s225_s3 }
   0x7   :  { %254 = vset.pattern.permute.xlu1 %v291_v30  ;;  %s265_s25 = scalar_lea.vmem %s226_s3, 32  ;;  %p270_p1 = scmp.lt.s32.totalorder %s226_s3, %s226_s3 }
   0x8   :  { %v118_v24 = vsub.s32 %v115_v21, %v117_v22  ;;  %v134_v31 = vsub.s32 0, %v117_v22  ;;  %v138_v32 = vsub.s32 1, %v117_v22  ;;  %p266_p0 = scmp.ne.s32.totalorder %s226_s3, %s265_s25  ;;  %p271_p2 = scmp.lt.s32.totalorder %s265_s25, %s265_s25 }
   0x9   :  { %247 = vmatmul.mubr.msk.bf16.vlgmr.msra.gmra.mrb[0].mxu0 %vm49_vm1, %v234_v5 }
   0xa   :  { %p272_p3 = por %p271_p2, %p270_p1 }
   0xc   :  { %p273_p4 = pnand %p272_p3, %p266_p0 }
  0xdc   :  { %v87_v7 = vpop.f32.mrb[0].mxu0 }
  0xdd   :  { %v88_v8 = vadd.f32 %v233_v6, %v87_v7  ;;  %v248_v9 = vpop.f32.mrb[1].mxu0 }
  0xde   :  { %v90_v10 = vpop.f32.mrb[2].mxu0 }
  0xdf   :  { %v94_v12 = vmax.f32 %v88_v8, 0.0  ;;  %v91_v13 = vadd.f32 %v233_v6, %v90_v10  ;;  %v249_v14 = vpop.f32.mrb[3].mxu0 }
  0xe1   :  { %v95_v15 = vmax.f32 %v91_v13, 0.0  ;;  %v103_v16 = vmul.f32 %v238_v11, %v94_v12 }
  0xe3   :  { %v106_v17 = vsel %vm105_vm2, %v103_v16, 0.0  ;;  %v104_v18 = vmul.f32 %v238_v11, %v95_v15 }
  0xe4   :  { %107 = vadd.xlane.f32.xlu0 %v106_v17 }
  0xe5   :  { %v109_v19 = vsel %vm105_vm2, %v104_v18, 0.0 }
  0xe8   :  { %110 = vadd.xlane.f32.xlu0 %v109_v19 }
 0x171   :  { %v108_v23 = vpop.xlane.xlu0 %107 }
 0x172   :  { %v119_v26 = vrot.slane %v108_v23, %v118_v24 }
 0x175   :  { %v111_v25 = vpop.xlane.xlu0 %110 }
 0x176   :  { %v123_v27 = vrot.slane %v111_v25, %v118_v24 }
 0x178   :  { %v125_v28 = vsel %vm124_vm3, %v123_v27, %v119_v26 }
 0x179   :  { %v128_v29 = vsel %vm127_vm4, %v125_v28, -inf }
 0x17a   :  { %129 = vmax.xlane.f32.xlu1 %v128_v29 }
 0x207   :  { %v130_v33 = vpop.xlane.xlu1 %129 }
 0x208   :  { %v135_v34 = vrot.slane %v130_v33, %v134_v31  ;;  %v139_v35 = vrot.slane %v130_v33, %v138_v32 }
 0x20a   :  { %v142_v36 = vsub.f32 %v108_v23, %v135_v34  ;;  %v143_v37 = vsub.f32 %v111_v25, %v139_v35 }
 0x20c   :  { %v144_v38 = vmul.f32 1.442695, %v142_v36  ;;  %v146_v39 = vmul.f32 1.442695, %v143_v37 }
 0x20e   :  { %259 = vpow2.f32 %v144_v38 }
 0x20f   :  { %261 = vpow2.f32 %v146_v39 }
 0x218   :  { %v260_v40 = vpop.eup %259 }
 0x219   :  { %v262_v41 = vpop.eup %261  ;;  %151 = vperm.xlu1 %254, %v260_v40  }
 0x21a   :  { %154 = vperm.xlu0 %255, %v262_v41  }
 0x298   :  { %v152_v42 = vpop.permute.xlu1 %151 }
 0x299   :  { %v155_v43 = vpop.permute.xlu0 %154  ;;  %v159_v44 = vrot.slane %v152_v42, %v118_v24 }
 0x29a   :  { %v163_v45 = vrot.slane %v155_v43, %v118_v24 }
 0x29c   :  { %v164_v46 = vsel %vm124_vm3, %v163_v45, %v159_v44 }
 0x29d   :  { %v166_v47 = vsel %vm127_vm4, %v164_v46, 0.0 }
 0x29e   :  { %167 = vadd.xlane.f32.xlu1 %v166_v47 }
 0x32b   :  { %v168_v48 = vpop.xlane.xlu1 %167 }
 0x32c   :  { %263 = vrcp.f32 %v168_v48 }
 0x336   :  { %v264_v49 = vpop.eup %263 }
 0x337   :  { %v174_v50 = vrot.slane %v264_v49, %v134_v31  ;;  %v178_v51 = vrot.slane %v264_v49, %v138_v32 }
 0x339   :  { %v181_v52 = vmul.f32 %v260_v40, %v174_v50  ;;  %v182_v54 = vmul.f32 %v262_v41, %v178_v51 }
 0x33b   :  { %v183_v53 = vpack.c.bf16 %v181_v52, %v181_v52  ;;  %v184_v55 = vpack.c.bf16 %v182_v54, %v182_v54 }
 0x33d   :  { %187 = vperm.xlu0 %255, %v183_v53  }
 0x341   :  { %192 = vperm.xlu0 %255, %v184_v55  }
 0x3bc   :  { %v188_v56 = vpop.permute.xlu0 %187 }
 0x3bd   :  { %v195_v57 = vmul.bf16 %v188_v56, %v327_v3 }
 0x3bf   :  { %v197_v58 = vunpack.c.l.bf16 %v195_v57 }
 0x3c0   :  { %v193_v59 = vpop.permute.xlu0 %192 }
 0x3c1   :  { %v199_v60 = vsel %vm49_vm1, %v197_v58, 0.0  ;;  %v196_v61 = vmul.bf16 %v193_v59, %v332_v4 }
 0x3c2   :  { %v200_v62 = vrot.slane %v199_v60, 4 }
 0x3c3   :  { %v198_v63 = vunpack.c.l.bf16 %v196_v61 }
 0x3c4   :  { %v201_v0 = vadd.f32 %v200_v62, %v199_v60 }
 0x3c5   :  { %v206_v1 = vsel %vm49_vm1, %v198_v63, 0.0 }
 0x3c6   :  { %v202_v2 = vrot.slane %v201_v0, 2  ;;  %v207_v5 = vrot.slane %v206_v1, 4 }
 0x3c8   :  { %v203_v6 = vadd.f32 %v202_v2, %v201_v0  ;;  %v208_v7 = vadd.f32 %v207_v5, %v206_v1 }
 0x3ca   :  { %v209_v8 = vrot.slane %v208_v7, 2  ;;  %v204_v9 = vrot.slane %v203_v6, 1 }
 0x3cc   :  { %v210_v10 = vadd.f32 %v209_v8, %v208_v7  ;;  %v205_v3 = vadd.f32 %v204_v9, %v203_v6 }
 0x3ce   :  { %v211_v11 = vrot.slane %v210_v10, 1 }
 0x3d0   :  { %v212_v12 = vadd.f32 %v211_v11, %v210_v10 }
 0x3d2   :  { %v215_v4 = vsel %vm124_vm3, %v212_v12, %v205_v3 }
 0x3d3   :  { %218 = vst.msk [vmem:[#allocation2] sm:$0x3] %vm217_vm5, %v215_v4 }
 0x3d4   :  { %276 = shalt.err (!%p273_p4)
}
 0x3d5   :  { %s277_s28 = scalar_lea.hbm %s368_s4, 32 }
 0x3d6   :  { %p278_p5 = scmp.ne.s32.totalorder %s368_s4, %s277_s28  ;;  %p281_p6 = scmp.lt.u32.totalorder %s277_s28, %s368_s4 }
 0x3d8   :  { %p283_p7 = pnand %p281_p6, %p278_p5 }
 0x3da   :  { %286 = shalt.err (!%p283_p7)
}
 0x3db   :  { %228 = dma.vmem_to_hbm [thread:$0]  %s226_s3, 32, %s368_s4, [#allocation3]  }
 0x3dc   :  { %287 = dma.done.wait [#allocation3], 32  }
 0x3dd   :  { %288 = vsyncadd [#allocation3], 4294967264 }
 0x3de   :  { %232 = vsyncpa [#allocation3], 1 }

</bundles_post_ra>
